<compile_context>
chip_gen: v5e
topology: v5e:2x2
jax: 0.10.0
libtpu: 0.0.40
codegen_flags: <defaults>
</compile_context>

<pallas_src>
import jax
import jax.numpy as jnp
from jax.experimental import pallas as pl
from jax.experimental.pallas import tpu as pltpu

_TARGET_TILE_BYTES = 2 * 1024 * 1024  # ~2 MiB per tile (4 bufs resident ~8 MiB)


def _relu_kernel(x_ref, o_ref):
    # Elementwise ReLU on the whole VMEM tile (VPU); weak-typed 0.0 keeps dtype.
    o_ref[...] = jnp.maximum(x_ref[...], 0.0)


def _choose_lane(total, max_lane=2048):
    """Largest power-of-two multiple of 128 (<= max_lane) that divides total."""
    if total % 128 != 0:
        return None
    rem = total // 128
    k = max_lane // 128
    while k > 1 and rem % k != 0:
        k //= 2
    return 128 * k


def _choose_block_rows(rows, lane, itemsize, sublane):
    """Pick a block row count: ~2 MiB tiles, sublane-aligned, even block count
    so the 'parallel' grid axis balances across v7x's two TensorCores."""
    target_rows = max(sublane,
                      (_TARGET_TILE_BYTES // (lane * itemsize)) // sublane * sublane)
    if rows <= target_rows:
        # Single block equal to the full array dims (always a legal BlockSpec).
        return rows
    nblocks = pl.cdiv(rows, target_rows)
    nblocks = ((nblocks + 1) // 2) * 2                      # even block count
    block_rows = pl.cdiv(rows, nblocks)
    block_rows = ((block_rows + sublane - 1) // sublane) * sublane
    return block_rows


def relu_pallas(x: jax.Array) -> jax.Array:
    """Elementwise ReLU matching torch.nn.ReLU on an NCHW activation."""
    orig_shape = x.shape
    total = x.size
    itemsize = jnp.dtype(x.dtype).itemsize
    sublane = {4: 8, 2: 16, 1: 32}.get(itemsize, 8)

    flat = x.reshape(-1)
    lane = _choose_lane(total)
    pad = 0
    if lane is None:
        # TODO(synk): ragged tail (total % 128 != 0) falls back to a minimal
        # pad/slice; never hit for this module's shapes.
        lane = 128
        padded = pl.cdiv(total, lane) * lane
        pad = padded - total
        flat = jnp.pad(flat, (0, pad))

    rows = flat.size // lane
    x2d = flat.reshape(rows, lane)                    # lane-dense 2-D slab

    block_rows = _choose_block_rows(rows, lane, itemsize, sublane)
    grid = (pl.cdiv(rows, block_rows),)               # partial tail masked by Pallas

    out2d = pl.pallas_call(
        _relu_kernel,
        out_shape=jax.ShapeDtypeStruct(x2d.shape, x2d.dtype),
        grid=grid,
        in_specs=[pl.BlockSpec((block_rows, lane), lambda i: (i, 0))],
        out_specs=pl.BlockSpec((block_rows, lane), lambda i: (i, 0)),
        compiler_params=pltpu.CompilerParams(
            dimension_semantics=("parallel",),        # v7x: shard grid across 2 TCs
        ),
        cost_estimate=pl.CostEstimate(
            flops=total,
            bytes_accessed=2 * total * itemsize,
            transcendentals=0,
        ),
    )(x2d)

    out_flat = out2d.reshape(-1)
    if pad:
        out_flat = out_flat[:total]
    return out_flat.reshape(orig_shape)


if __name__ == "__main__":
    key = jax.random.PRNGKey(0)

    # Small shape consistent with the module's forward (NCHW activation map).
    x_small = jax.random.normal(key, (2, 4, 16, 16), dtype=jnp.float32)
    y_small = relu_pallas(x_small)
    jax.block_until_ready(y_small)
    assert y_small.shape == x_small.shape and y_small.dtype == x_small.dtype
    assert jnp.array_equal(y_small, jnp.maximum(x_small, 0.0)), "ReLU mismatch (small)"

    # Module's actual activation shape (1, 1024, 28, 28): zero-copy path,
    # lane=2048, rows=392, two balanced (200 / 192)-row blocks on the
    # parallel grid axis.
    x_full = jax.random.normal(key, (1, 1024, 28, 28), dtype=jnp.float32)
    y_full = relu_pallas(x_full)
    jax.block_until_ready(y_full)
    assert y_full.shape == x_full.shape and y_full.dtype == x_full.dtype
    assert jnp.array_equal(y_full, jnp.maximum(x_full, 0.0)), "ReLU mismatch (full)"

    print("KERNEL_OK")
</pallas_src>

<mosaic_0001>
module attributes {stable_mosaic.version = 11 : i64} {
  func.func @_relu_kernel(%arg0: i32, %arg1: memref<1x2048xf32, #tpu.memory_space<vmem>>, %arg2: memref<1x2048xf32, #tpu.memory_space<vmem>>) attributes {dimension_semantics = [#tpu.dimension_semantics<parallel>], iteration_bounds = array<i64: 1>, scalar_prefetch = 0 : i64, scratch_operands = 0 : i64, tpu.core_type = #tpu.core_type<tc>, window_params = [{transform_indices = @transform_0, window_bounds = array<i64: 1, 2048>}, {transform_indices = @transform_1, window_bounds = array<i64: 1, 2048>}]} {
    %c0 = arith.constant 0 : index
    %c0_0 = arith.constant 0 : index
    %0 = vector.load %arg1[%c0, %c0_0] : memref<1x2048xf32, #tpu.memory_space<vmem>>, vector<1x2048xf32>
    %cst = arith.constant 0.000000e+00 : f32
    %1 = vector.broadcast %cst : f32 to vector<1x2048xf32>
    %2 = arith.maximumf %0, %1 : vector<1x2048xf32>
    %c0_1 = arith.constant 0 : index
    %c0_2 = arith.constant 0 : index
    %3 = vector.load %arg2[%c0_1, %c0_2] : memref<1x2048xf32, #tpu.memory_space<vmem>>, vector<1x2048xf32>
    tpu.vector_store %arg2[%c0_1, %c0_2], %2 {strides = array<i32>} : memref<1x2048xf32, #tpu.memory_space<vmem>>, vector<1x2048xf32>,
    return
  }
  func.func @transform_0(%arg0: i32) -> (i32, i32) {
    %c0_i32 = arith.constant 0 : i32
    %c0_i32_0 = arith.constant 0 : i32
    return %arg0, %c0_i32 : i32, i32
  }
  func.func @transform_1(%arg0: i32) -> (i32, i32) {
    %c0_i32 = arith.constant 0 : i32
    %c0_i32_0 = arith.constant 0 : i32
    return %arg0, %c0_i32 : i32, i32
  }
}

</mosaic_0001>

<bundles_post_ra>
// kernel: tpu_custom_call.1
= control target key start
LH: loop header
LB: loop body
LE: loop exit
PB: predicated region body
PF: predicated region fallthrough
CT: control target
= control target key end

     0   :  { %6 = vsyncpa [#allocation3], 0  ;;  %s118_s0 = inlined_call_operand.hbm [shape: f32[1,2048], index: 0, kind: input, shape index: {}]   ;;  %s119_s1 = inlined_call_operand.hbm [shape: f32[1,2048], index: 1, kind: output, shape index: {}]  }
   0x1   :  { %7 = vsyncpa [#allocation4], 0  ;;  %s13_s8 = sshll.u32 %s118_s0, 4  ;;  %s100_s9 = smov [#allocation2]   ;;  %s14_s8 = int_to_ptr.hbm [resolvable:$true] %s13_s8 }
   0x2   :  { %s15_s10 = sshll.u32 %s100_s9, 4  ;;  %s16_s10 = int_to_ptr.vmem [resolvable:$true] %s15_s10 }
   0x3   :  { %18 = dma.hbm_to_vmem [thread:$0]  %s14_s8, 256, %s16_s10, [#allocation3]  }
   0x4   :  { %96 = dma.done.wait [#allocation3], 256  }
   0x5   :  { %97 = vsyncadd [#allocation3], 4294967040  ;;  %s101_s11 = smov [#allocation5]   ;;  %s36_s15 = sshll.u32 %s119_s1, 4  ;;  %v23_v0 = vld [vmem:[#allocation2] sm:$0xff]  ;;  %v24_v1 = vld [vmem:[#allocation2 + $0x8] sm:$0xff]  ;;  %s37_s15 = int_to_ptr.hbm [resolvable:$true] %s36_s15 }
   0x6   :  { %s34_s12 = sshll.u32 %s101_s11, 4  ;;  %v25_v2 = vmax.f32 %v23_v0, 0.0  ;;  %v26_v3 = vmax.f32 %v24_v1, 0.0  ;;  %s35_s12 = int_to_ptr.vmem [resolvable:$true] %s34_s12 }
   0x8   :  { %27 = vst [vmem:[#allocation5] sm:$0xff] %v25_v2 }
   0x9   :  { %28 = vst [vmem:[#allocation5 + $0x8] sm:$0xff] %v26_v3 }
   0xa   :  { %39 = dma.vmem_to_hbm [thread:$0]  %s35_s12, 256, %s37_s15, [#allocation4]  }
   0xb   :  { %98 = dma.done.wait [#allocation4], 256  }
   0xc   :  { %99 = vsyncadd [#allocation4], 4294967040 }
   0xd   :  { %44 = vsyncpa [#allocation3], 1 }
   0xe   :  { %45 = vsyncpa [#allocation4], 1 }

</bundles_post_ra>
